<compile_context>
chip_gen: v7x
topology: tpu7x:2x2x1
jax: 0.10.0
libtpu: 0.0.40
codegen_flags: <defaults>
</compile_context>

<pallas_src>
import functools
import math

import jax
import jax.numpy as jnp
from jax import lax
from jax.experimental import pallas as pl
from jax.experimental.pallas import tpu as pltpu


def build_pe_table(d_model: int, max_len: int) -> jnp.ndarray:
    """Fixed sinusoidal table, shape [max_len + 1, d_model]; last row is zeros."""
    assert d_model % 2 == 0, "FixedPositionalEncoding requires an even d_model"
    position = jnp.arange(0.0, max_len, dtype=jnp.float32)[:, None]
    div_term = jnp.exp(
        jnp.arange(0.0, d_model, 2.0, dtype=jnp.float32)
        * (-(math.log(10000.0) / d_model)))
    pe = jnp.zeros((max_len, d_model), dtype=jnp.float32)
    pe = pe.at[:, 0::2].set(jnp.sin(position * div_term))
    pe = pe.at[:, 1::2].set(jnp.cos(position * div_term))
    pe = jnp.concatenate([pe, jnp.zeros((1, d_model), dtype=jnp.float32)], axis=0)
    return pe


def _round_up(x: int, m: int) -> int:
    return ((x + m - 1) // m) * m


def _kernel(gidx_ref, x_ref, pe_ref, out_ref, *, scale):
    """out = scale * x + pe[gidx], per-slot exact one-hot bf16 MXU gather."""
    # gidx_ref: (TM, fold) int32    clamped index per folded slot
    # x_ref   : (TM, W)    x.dtype  W = fold * d_model (lane-dense when possible)
    # pe_ref  : (3, P, D)  bf16     hi/mid/lo split of the f32 table (exact sum)
    # out_ref : (TM, W)    x.dtype
    fold = gidx_ref.shape[1]
    p_pad, d_model = pe_ref.shape[1], pe_ref.shape[2]

    col_ids = lax.broadcasted_iota(jnp.int32, (1, p_pad), 1)   # shared by all slots
    gidx = gidx_ref[...]                                       # (TM, fold)
    pe_hi = pe_ref[0]
    pe_mid = pe_ref[1]
    pe_lo = pe_ref[2]

    for k in range(fold):                                      # small static unroll
        # Exact 0/1 one-hot in bf16: a single compare over p_pad columns per slot.
        onehot = jnp.where(col_ids == gidx[:, k:k + 1], 1.0, 0.0).astype(jnp.bfloat16)
        # Exact f32 gather via three single-pass bf16 matmuls (pe == hi + mid + lo).
        rows = (jnp.dot(onehot, pe_hi, preferred_element_type=jnp.float32)
                + jnp.dot(onehot, pe_mid, preferred_element_type=jnp.float32)
                + jnp.dot(onehot, pe_lo, preferred_element_type=jnp.float32))
        c0 = k * d_model
        xk = x_ref[:, c0:c0 + d_model].astype(jnp.float32)
        out_ref[:, c0:c0 + d_model] = (scale * xk + rows).astype(out_ref.dtype)


def _pick_row_tile(n_f, w, fold, p_pad, d_model, x_itemsize, out_itemsize,
                   max_tile=2048):
    """Generation-aware row tile and vmem limit."""
    try:
        cap = int(getattr(pltpu.get_tpu_info(), "vmem_capacity_bytes", 64 << 20))
    except Exception:
        cap = 64 << 20                              # conservative (v7x per-core)

    resident = 2 * 3 * p_pad * d_model * 2          # pe parts, bf16, double-buffered
    vmem_limit = min((cap * 3) // 4, 96 << 20)
    if resident + (8 << 20) > vmem_limit:           # long tables: raise the limit
        vmem_limit = min(cap, resident + (8 << 20))
    budget = max(vmem_limit - resident - (2 << 20), 1 << 20)

    def need(t):
        return (2 * t * w * x_itemsize              # x block, double-buffered
                + 2 * t * w * out_itemsize          # out block, double-buffered
                + 2 * t * fold * 4                  # index block, double-buffered
                + t * p_pad * 8                     # iota / one-hot / compare temps
                + t * w * 8)                        # f32 math temporaries

    if n_f <= 8:                                    # single full-array block
        return int(n_f), int(vmem_limit)

    tile = min(max_tile, _round_up(n_f, 8))
    while tile > 8 and need(tile) > budget:
        tile = _round_up(tile // 2, 8)
    # Keep >= ~4 grid steps when possible so v7x's two TensorCores get sharded work
    # and the DMA pipeline has something to overlap; harmless on v5e/v6e.
    tile = min(tile, max(8, _round_up((n_f + 3) // 4, 8)))
    return int(max(tile, 8)), int(vmem_limit)


def fixed_positional_encoding(x, mask, indices, pe):
    """x: [B, L, D] float, mask: [B, L] bool/int, indices: [B, L] int, pe: [P+1, D] f32."""
    B, L, D = x.shape
    P1 = pe.shape[0]
    padding_idx = P1 - 1
    N = B * L

    # ---- vectorized index clamp, matching the PyTorch module ------------------
    idx = indices.astype(jnp.int32)
    idx = jnp.where(mask.astype(jnp.bool_), padding_idx, idx)
    idx = jnp.where(idx > padding_idx, padding_idx, idx)
    # torch's pe[padded] wraps negative ranks python-style; mirror that, then clip
    # as a guard for indices the torch module would have faulted on.
    idx = jnp.where(idx < 0, idx + P1, idx)
    idx = jnp.clip(idx, 0, padding_idx)

    # ---- fold logical rows so the kernel's last dim is lane-dense --------------
    fold = 128 // math.gcd(D, 128)      # power of two; fold*D = lcm(D, 128)
    while fold > 16:                    # bound the static in-kernel unroll
        fold //= 2
    fold = math.gcd(fold, N)            # must divide B*L so no padding pass is needed
    W = fold * D
    n_f = N // fold

    x2 = x.reshape(n_f, W)              # free reshape, NATIVE dtype (no cast / pad)
    gidx = idx.reshape(n_f, fold)

    # ---- exact f32 table as three bf16 parts (single-pass MXU gathers) --------
    p_pad = _round_up(P1, 16)
    pe_f32 = jnp.pad(pe.astype(jnp.float32), ((0, p_pad - P1), (0, 0)))
    pe_hi = pe_f32.astype(jnp.bfloat16)
    r1 = pe_f32 - pe_hi.astype(jnp.float32)
    pe_mid = r1.astype(jnp.bfloat16)
    pe_lo = (r1 - pe_mid.astype(jnp.float32)).astype(jnp.bfloat16)
    pe_parts = jnp.stack([pe_hi, pe_mid, pe_lo])            # (3, p_pad, D) bf16

    tile, vmem_limit = _pick_row_tile(
        n_f, W, fold, p_pad, D, x.dtype.itemsize, x.dtype.itemsize)
    n_steps = (n_f + tile - 1) // tile  # ragged last block handled by Pallas masking

    kernel = functools.partial(_kernel, scale=math.sqrt(float(D)))
    out = pl.pallas_call(
        kernel,
        out_shape=jax.ShapeDtypeStruct((n_f, W), x.dtype),
        grid_spec=pltpu.PrefetchScalarGridSpec(
            num_scalar_prefetch=0,
            grid=(n_steps,),
            in_specs=[
                pl.BlockSpec((tile, fold), lambda i: (i, 0)),       # clamped indices
                pl.BlockSpec((tile, W), lambda i: (i, 0)),          # x rows, native dtype
                pl.BlockSpec((3, p_pad, D), lambda i: (0, 0, 0)),   # pe parts (resident)
            ],
            out_specs=pl.BlockSpec((tile, W), lambda i: (i, 0)),
        ),
        compiler_params=pltpu.CompilerParams(
            dimension_semantics=("parallel",),
            vmem_limit_bytes=vmem_limit,
        ),
    )(gidx, x2, pe_parts)

    return out.reshape(B, L, D)


if __name__ == "__main__":
    d_model = 32
    max_len = 64
    batch = 2
    slate_len = 8

    pe = build_pe_table(d_model, max_len)
    padding_idx = pe.shape[0] - 1  # == max_len

    key = jax.random.PRNGKey(0)
    kx, km, ki = jax.random.split(key, 3)
    x = jax.random.normal(kx, (batch, slate_len, d_model), dtype=jnp.float32)
    mask = jax.random.bernoulli(km, 0.3, (batch, slate_len))                   # bool
    indices = jax.random.randint(ki, (batch, slate_len), 0, max_len + 5,
                                 dtype=jnp.int32)                              # exercises clamp

    out = fixed_positional_encoding(x, mask, indices, pe)
    out = jax.block_until_ready(out)

    # Pure-JAX reference for correctness.
    padded = jnp.where(mask, padding_idx, indices)
    padded = jnp.where(padded > padding_idx, padding_idx, padded)
    expected = math.sqrt(d_model) * x + pe[padded, :]

    assert out.shape == expected.shape and out.dtype == expected.dtype
    assert jnp.allclose(out, expected, atol=1e-5, rtol=1e-5), "mismatch vs reference"

    print("KERNEL_OK")
</pallas_src>

<mosaic_0001>
module attributes {stable_mosaic.version = 11 : i64} {
  func.func @_kernel(%arg0: i32, %arg1: memref<4x4xi32, #tpu.memory_space<vmem>>, %arg2: memref<4x128xf32, #tpu.memory_space<vmem>>, %arg3: memref<3x80x32xbf16, #tpu.memory_space<vmem>>, %arg4: memref<4x128xf32, #tpu.memory_space<vmem>>) attributes {dimension_semantics = [#tpu.dimension_semantics<parallel>], iteration_bounds = array<i64: 1>, scalar_prefetch = 0 : i64, scratch_operands = 0 : i64, tpu.core_type = #tpu.core_type<tc>, window_params = [{transform_indices = @transform_0, window_bounds = array<i64: 4, 4>}, {transform_indices = @transform_1, window_bounds = array<i64: 4, 128>}, {pipeline_mode = #tpu.pipeline_mode<synchronous>, transform_indices = @transform_2, window_bounds = array<i64: 3, 80, 32>}, {transform_indices = @transform_3, window_bounds = array<i64: 4, 128>}]} {
    %0 = tpu.iota {dimensions = array<i32: 1>} : vector<1x80xi32>
    %c0 = arith.constant 0 : index
    %c0_0 = arith.constant 0 : index
    %1 = vector.load %arg1[%c0, %c0_0] : memref<4x4xi32, #tpu.memory_space<vmem>>, vector<4x4xi32>
    %c0_1 = arith.constant 0 : index
    %c0_2 = arith.constant 0 : index
    %c0_3 = arith.constant 0 : index
    %2 = vector.load %arg3[%c0_1, %c0_2, %c0_3] : memref<3x80x32xbf16, #tpu.memory_space<vmem>>, vector<1x80x32xbf16>
    %3 = vector.shape_cast %2 : vector<1x80x32xbf16> to vector<80x32xbf16>
    %c1 = arith.constant 1 : index
    %c0_4 = arith.constant 0 : index
    %c0_5 = arith.constant 0 : index
    %4 = vector.load %arg3[%c1, %c0_4, %c0_5] : memref<3x80x32xbf16, #tpu.memory_space<vmem>>, vector<1x80x32xbf16>
    %5 = vector.shape_cast %4 : vector<1x80x32xbf16> to vector<80x32xbf16>
    %c2 = arith.constant 2 : index
    %c0_6 = arith.constant 0 : index
    %c0_7 = arith.constant 0 : index
    %6 = vector.load %arg3[%c2, %c0_6, %c0_7] : memref<3x80x32xbf16, #tpu.memory_space<vmem>>, vector<1x80x32xbf16>
    %7 = vector.shape_cast %6 : vector<1x80x32xbf16> to vector<80x32xbf16>
    %8 = vector.extract_strided_slice %1 {offsets = [0, 0], sizes = [4, 1], strides = [1, 1]} : vector<4x4xi32> to vector<4x1xi32>
    %9 = vector.broadcast %0 : vector<1x80xi32> to vector<4x80xi32>
    %10 = vector.broadcast %8 : vector<4x1xi32> to vector<4x80xi32>
    %11 = arith.cmpi eq, %9, %10 : vector<4x80xi32>
    %cst = arith.constant 1.000000e+00 : f32
    %cst_8 = arith.constant 0.000000e+00 : f32
    %12 = vector.broadcast %cst : f32 to vector<4x80xf32>
    %13 = vector.broadcast %cst_8 : f32 to vector<4x80xf32>
    %14 = arith.select %11, %12, %13 : vector<4x80xi1>, vector<4x80xf32>
    %15 = arith.truncf %14 : vector<4x80xf32> to vector<4x80xbf16>
    %cst_9 = arith.constant dense<0.000000e+00> : vector<4x32xf32>
    %16 = tpu.matmul %15, %3, %cst_9 {dimension_numbers = #tpu.dot_dimension_numbers<[1], [0], [0], [1], [0, 0, 1, 1], [], []>} : vector<4x80xbf16>, vector<80x32xbf16>, vector<4x32xf32> -> vector<4x32xf32>
    %cst_10 = arith.constant dense<0.000000e+00> : vector<4x32xf32>
    %17 = tpu.matmul %15, %5, %cst_10 {dimension_numbers = #tpu.dot_dimension_numbers<[1], [0], [0], [1], [0, 0, 1, 1], [], []>} : vector<4x80xbf16>, vector<80x32xbf16>, vector<4x32xf32> -> vector<4x32xf32>
    %18 = arith.addf %16, %17 : vector<4x32xf32>
    %cst_11 = arith.constant dense<0.000000e+00> : vector<4x32xf32>
    %19 = tpu.matmul %15, %7, %cst_11 {dimension_numbers = #tpu.dot_dimension_numbers<[1], [0], [0], [1], [0, 0, 1, 1], [], []>} : vector<4x80xbf16>, vector<80x32xbf16>, vector<4x32xf32> -> vector<4x32xf32>
    %20 = arith.addf %18, %19 : vector<4x32xf32>
    %c0_12 = arith.constant 0 : index
    %c0_13 = arith.constant 0 : index
    %21 = vector.load %arg2[%c0_12, %c0_13] : memref<4x128xf32, #tpu.memory_space<vmem>>, vector<4x32xf32>
    %cst_14 = arith.constant 5.65685415 : f32
    %22 = vector.broadcast %cst_14 : f32 to vector<4x32xf32>
    %23 = arith.mulf %22, %21 : vector<4x32xf32>
    %24 = arith.addf %23, %20 : vector<4x32xf32>
    %c0_15 = arith.constant 0 : index
    %c0_16 = arith.constant 0 : index
    %25 = vector.load %arg4[%c0_15, %c0_16] : memref<4x128xf32, #tpu.memory_space<vmem>>, vector<4x32xf32>
    tpu.vector_store %arg4[%c0_15, %c0_16], %24 {strides = array<i32>} : memref<4x128xf32, #tpu.memory_space<vmem>>, vector<4x32xf32>,
    %26 = vector.extract_strided_slice %1 {offsets = [0, 1], sizes = [4, 1], strides = [1, 1]} : vector<4x4xi32> to vector<4x1xi32>
    %27 = vector.broadcast %0 : vector<1x80xi32> to vector<4x80xi32>
    %28 = vector.broadcast %26 : vector<4x1xi32> to vector<4x80xi32>
    %29 = arith.cmpi eq, %27, %28 : vector<4x80xi32>
    %cst_17 = arith.constant 1.000000e+00 : f32
    %cst_18 = arith.constant 0.000000e+00 : f32
    %30 = vector.broadcast %cst_17 : f32 to vector<4x80xf32>
    %31 = vector.broadcast %cst_18 : f32 to vector<4x80xf32>
    %32 = arith.select %29, %30, %31 : vector<4x80xi1>, vector<4x80xf32>
    %33 = arith.truncf %32 : vector<4x80xf32> to vector<4x80xbf16>
    %cst_19 = arith.constant dense<0.000000e+00> : vector<4x32xf32>
    %34 = tpu.matmul %33, %3, %cst_19 {dimension_numbers = #tpu.dot_dimension_numbers<[1], [0], [0], [1], [0, 0, 1, 1], [], []>} : vector<4x80xbf16>, vector<80x32xbf16>, vector<4x32xf32> -> vector<4x32xf32>
    %cst_20 = arith.constant dense<0.000000e+00> : vector<4x32xf32>
    %35 = tpu.matmul %33, %5, %cst_20 {dimension_numbers = #tpu.dot_dimension_numbers<[1], [0], [0], [1], [0, 0, 1, 1], [], []>} : vector<4x80xbf16>, vector<80x32xbf16>, vector<4x32xf32> -> vector<4x32xf32>
    %36 = arith.addf %34, %35 : vector<4x32xf32>
    %cst_21 = arith.constant dense<0.000000e+00> : vector<4x32xf32>
    %37 = tpu.matmul %33, %7, %cst_21 {dimension_numbers = #tpu.dot_dimension_numbers<[1], [0], [0], [1], [0, 0, 1, 1], [], []>} : vector<4x80xbf16>, vector<80x32xbf16>, vector<4x32xf32> -> vector<4x32xf32>
    %38 = arith.addf %36, %37 : vector<4x32xf32>
    %c0_22 = arith.constant 0 : index
    %c32 = arith.constant 32 : index
    %39 = vector.load %arg2[%c0_22, %c32] : memref<4x128xf32, #tpu.memory_space<vmem>>, vector<4x32xf32>
    %cst_23 = arith.constant 5.65685415 : f32
    %40 = vector.broadcast %cst_23 : f32 to vector<4x32xf32>
    %41 = arith.mulf %40, %39 : vector<4x32xf32>
    %42 = arith.addf %41, %38 : vector<4x32xf32>
    %c0_24 = arith.constant 0 : index
    %c32_25 = arith.constant 32 : index
    %43 = vector.load %arg4[%c0_24, %c32_25] : memref<4x128xf32, #tpu.memory_space<vmem>>, vector<4x32xf32>
    tpu.vector_store %arg4[%c0_24, %c32_25], %42 {strides = array<i32>} : memref<4x128xf32, #tpu.memory_space<vmem>>, vector<4x32xf32>,
    %44 = vector.extract_strided_slice %1 {offsets = [0, 2], sizes = [4, 1], strides = [1, 1]} : vector<4x4xi32> to vector<4x1xi32>
    %45 = vector.broadcast %0 : vector<1x80xi32> to vector<4x80xi32>
    %46 = vector.broadcast %44 : vector<4x1xi32> to vector<4x80xi32>
    %47 = arith.cmpi eq, %45, %46 : vector<4x80xi32>
    %cst_26 = arith.constant 1.000000e+00 : f32
    %cst_27 = arith.constant 0.000000e+00 : f32
    %48 = vector.broadcast %cst_26 : f32 to vector<4x80xf32>
    %49 = vector.broadcast %cst_27 : f32 to vector<4x80xf32>
    %50 = arith.select %47, %48, %49 : vector<4x80xi1>, vector<4x80xf32>
    %51 = arith.truncf %50 : vector<4x80xf32> to vector<4x80xbf16>
    %cst_28 = arith.constant dense<0.000000e+00> : vector<4x32xf32>
    %52 = tpu.matmul %51, %3, %cst_28 {dimension_numbers = #tpu.dot_dimension_numbers<[1], [0], [0], [1], [0, 0, 1, 1], [], []>} : vector<4x80xbf16>, vector<80x32xbf16>, vector<4x32xf32> -> vector<4x32xf32>
    %cst_29 = arith.constant dense<0.000000e+00> : vector<4x32xf32>
    %53 = tpu.matmul %51, %5, %cst_29 {dimension_numbers = #tpu.dot_dimension_numbers<[1], [0], [0], [1], [0, 0, 1, 1], [], []>} : vector<4x80xbf16>, vector<80x32xbf16>, vector<4x32xf32> -> vector<4x32xf32>
    %54 = arith.addf %52, %53 : vector<4x32xf32>
    %cst_30 = arith.constant dense<0.000000e+00> : vector<4x32xf32>
    %55 = tpu.matmul %51, %7, %cst_30 {dimension_numbers = #tpu.dot_dimension_numbers<[1], [0], [0], [1], [0, 0, 1, 1], [], []>} : vector<4x80xbf16>, vector<80x32xbf16>, vector<4x32xf32> -> vector<4x32xf32>
    %56 = arith.addf %54, %55 : vector<4x32xf32>
    %c0_31 = arith.constant 0 : index
    %c64 = arith.constant 64 : index
    %57 = vector.load %arg2[%c0_31, %c64] : memref<4x128xf32, #tpu.memory_space<vmem>>, vector<4x32xf32>
    %cst_32 = arith.constant 5.65685415 : f32
    %58 = vector.broadcast %cst_32 : f32 to vector<4x32xf32>
    %59 = arith.mulf %58, %57 : vector<4x32xf32>
    %60 = arith.addf %59, %56 : vector<4x32xf32>
    %c0_33 = arith.constant 0 : index
    %c64_34 = arith.constant 64 : index
    %61 = vector.load %arg4[%c0_33, %c64_34] : memref<4x128xf32, #tpu.memory_space<vmem>>, vector<4x32xf32>
    tpu.vector_store %arg4[%c0_33, %c64_34], %60 {strides = array<i32>} : memref<4x128xf32, #tpu.memory_space<vmem>>, vector<4x32xf32>,
    %62 = vector.extract_strided_slice %1 {offsets = [0, 3], sizes = [4, 1], strides = [1, 1]} : vector<4x4xi32> to vector<4x1xi32>
    %63 = vector.broadcast %0 : vector<1x80xi32> to vector<4x80xi32>
    %64 = vector.broadcast %62 : vector<4x1xi32> to vector<4x80xi32>
    %65 = arith.cmpi eq, %63, %64 : vector<4x80xi32>
    %cst_35 = arith.constant 1.000000e+00 : f32
    %cst_36 = arith.constant 0.000000e+00 : f32
    %66 = vector.broadcast %cst_35 : f32 to vector<4x80xf32>
    %67 = vector.broadcast %cst_36 : f32 to vector<4x80xf32>
    %68 = arith.select %65, %66, %67 : vector<4x80xi1>, vector<4x80xf32>
    %69 = arith.truncf %68 : vector<4x80xf32> to vector<4x80xbf16>
    %cst_37 = arith.constant dense<0.000000e+00> : vector<4x32xf32>
    %70 = tpu.matmul %69, %3, %cst_37 {dimension_numbers = #tpu.dot_dimension_numbers<[1], [0], [0], [1], [0, 0, 1, 1], [], []>} : vector<4x80xbf16>, vector<80x32xbf16>, vector<4x32xf32> -> vector<4x32xf32>
    %cst_38 = arith.constant dense<0.000000e+00> : vector<4x32xf32>
    %71 = tpu.matmul %69, %5, %cst_38 {dimension_numbers = #tpu.dot_dimension_numbers<[1], [0], [0], [1], [0, 0, 1, 1], [], []>} : vector<4x80xbf16>, vector<80x32xbf16>, vector<4x32xf32> -> vector<4x32xf32>
    %72 = arith.addf %70, %71 : vector<4x32xf32>
    %cst_39 = arith.constant dense<0.000000e+00> : vector<4x32xf32>
    %73 = tpu.matmul %69, %7, %cst_39 {dimension_numbers = #tpu.dot_dimension_numbers<[1], [0], [0], [1], [0, 0, 1, 1], [], []>} : vector<4x80xbf16>, vector<80x32xbf16>, vector<4x32xf32> -> vector<4x32xf32>
    %74 = arith.addf %72, %73 : vector<4x32xf32>
    %c0_40 = arith.constant 0 : index
    %c96 = arith.constant 96 : index
    %75 = vector.load %arg2[%c0_40, %c96] : memref<4x128xf32, #tpu.memory_space<vmem>>, vector<4x32xf32>
    %cst_41 = arith.constant 5.65685415 : f32
    %76 = vector.broadcast %cst_41 : f32 to vector<4x32xf32>
    %77 = arith.mulf %76, %75 : vector<4x32xf32>
    %78 = arith.addf %77, %74 : vector<4x32xf32>
    %c0_42 = arith.constant 0 : index
    %c96_43 = arith.constant 96 : index
    %79 = vector.load %arg4[%c0_42, %c96_43] : memref<4x128xf32, #tpu.memory_space<vmem>>, vector<4x32xf32>
    tpu.vector_store %arg4[%c0_42, %c96_43], %78 {strides = array<i32>} : memref<4x128xf32, #tpu.memory_space<vmem>>, vector<4x32xf32>,
    return
  }
  func.func @transform_0(%arg0: i32) -> (i32, i32) {
    %c0_i32 = arith.constant 0 : i32
    %c0_i32_0 = arith.constant 0 : i32
    return %arg0, %c0_i32 : i32, i32
  }
  func.func @transform_1(%arg0: i32) -> (i32, i32) {
    %c0_i32 = arith.constant 0 : i32
    %c0_i32_0 = arith.constant 0 : i32
    return %arg0, %c0_i32 : i32, i32
  }
  func.func @transform_2(%arg0: i32) -> (i32, i32, i32) {
    %c0_i32 = arith.constant 0 : i32
    %c0_i32_0 = arith.constant 0 : i32
    %c0_i32_1 = arith.constant 0 : i32
    %c0_i32_2 = arith.constant 0 : i32
    return %c0_i32, %c0_i32_0, %c0_i32_1 : i32, i32, i32
  }
  func.func @transform_3(%arg0: i32) -> (i32, i32) {
    %c0_i32 = arith.constant 0 : i32
    %c0_i32_0 = arith.constant 0 : i32
    return %arg0, %c0_i32 : i32, i32
  }
}

</mosaic_0001>

<bundles_post_ra>
// kernel: tpu_custom_call.1
= control target key start
LH: loop header
LB: loop body
LE: loop exit
PB: predicated region body
PF: predicated region fallthrough
CT: control target
= control target key end

     0   :  { %v1073_v1 = vmov 0   ;;  %v1074_v2 = vmov 2   ;;  %v1075_v4 = vmov 0.0   ;;  %v1076_v6 = vmov 1   ;;  %s1371_s0 = inlined_call_operand.vmem [shape: s32[4,4], index: 0, kind: input, shape index: {}]   ;;  %s1372_s1 = inlined_call_operand.vmem [shape: f32[4,128], index: 1, kind: input, shape index: {}]   ;;  %s1373_s2 = inlined_call_operand.vmem [shape: bf16[3,80,32], index: 2, kind: input, shape index: {}]   ;;  %s1374_s3 = inlined_call_operand.hbm [shape: f32[4,128], index: 3, kind: output, shape index: {}]  }
   0x1   :  { %v18_v0 = vld [vmem:[%s1371_s0] sm:$0xf]  ;;  %1029 = vset.pattern.permute.xlu0 %v1073_v1  ;;  %1031 = vset.pattern.permute.xlu1 %v1074_v2  ;;  %v1109_v3 = vld [vmem:[%s1373_s2 + $0x28] sm:$0xff]   ;;  %v1117_v5 = vld [vmem:[%s1373_s2 + $0x30] sm:$0xff]   ;;  %v1077_v7 = vmov 3   ;;  %vm1078_vm0 = vmmov 0  }
   0x2   :  { %52 = vperm.xlu0 %1029, %v18_v0   ;;  %417 = vperm.xlu1 %1031, %v18_v0   ;;  %v1125_v8 = vld [vmem:[%s1373_s2 + $0x38] sm:$0xff]   ;;  %v1139_v9 = vld [vmem:[%s1373_s2 + $0x40] sm:$0xff]  }
   0x3   :  { %827 = vmatprep.subr.bf16.mxu0 %v1075_v4  ;;  %869 = vmatprep.subr.bf16.mxu1 %v1075_v4 }
   0x4   :  { %828 = vmatpush3.bf16.msra.mxu0 %v1109_v3  ;;  %870 = vmatpush3.bf16.msra.mxu1 %v1109_v3 }
   0x5   :  { %829 = vmatprep.subr.bf16.mxu0 %v1075_v4  ;;  %871 = vmatprep.subr.bf16.mxu1 %v1075_v4 }
   0x6   :  { %1030 = vset.pattern.permute.xlu0 %v1076_v6  ;;  %1032 = vset.pattern.permute.xlu1 %v1077_v7 }
   0x7   :  { %278 = vperm.xlu0 %1030, %v18_v0   ;;  %556 = vperm.xlu1 %1032, %v18_v0  }
   0x8   :  { %830 = vmatpush3.bf16.msra.mxu0 %v1117_v5  ;;  %872 = vmatpush3.bf16.msra.mxu1 %v1117_v5 }
   0x9   :  { %831 = vmatprep.subr.bf16.mxu0 %v1075_v4  ;;  %873 = vmatprep.subr.bf16.mxu1 %v1075_v4 }
   0xa   :  { %837 = vmatprep.mubr.msk.bf16.mxu0 %vm1078_vm0, %v1075_v4  ;;  %879 = vmatprep.mubr.msk.bf16.mxu1 %vm1078_vm0, %v1075_v4 }
   0xb   :  { %1033 = vset.pattern.permute.xlu0 %v1077_v7 }
   0xc   :  { %832 = vmatpush3.bf16.msra.mxu0 %v1125_v8  ;;  %874 = vmatpush3.bf16.msra.mxu1 %v1125_v8 }
   0xd   :  { %833 = vmatprep.subr.bf16.mxu0 %v1075_v4  ;;  %875 = vmatprep.subr.bf16.mxu1 %v1075_v4 }
   0xe   :  { %8 = vsyncpa [#allocation3], 0  ;;  %v1148_v10 = vld [vmem:[%s1373_s2 + $0x48] sm:$0xff]   ;;  %v16_v11 = vlaneseq  ;;  %vm87_vm2 = vcmask 654336   ;;  %v1164_v15 = vld [vmem:[%s1373_s2] sm:$0xff]   ;;  %vm275_vm6 = vcmask 257024  }
   0xf   :  { %v1172_v18 = vld [vmem:[%s1373_s2 + $0x8] sm:$0xff]   ;;  %v1183_v21 = vld [vmem:[%s1373_s2 + $0x10] sm:$0xff]   ;;  %v1194_v22 = vld [vmem:[%s1373_s2 + $0x18] sm:$0xff]   ;;  %s1079_s0 = smov 32   ;;  %s1080_s17 = smov 64   ;;  %vm414_vm7 = vcmask 519424  }
  0x10   :  { %834 = vmatpush3.bf16.msra.mxu0 %v1139_v9  ;;  %876 = vmatpush3.bf16.msra.mxu1 %v1139_v9  ;;  %v1157_v12 = vand.u32 127, %v16_v11  ;;  %v1203_v23 = vld [vmem:[%s1373_s2 + $0x20] sm:$0xff]   ;;  %v1212_v24 = vld [vmem:[%s1373_s2 + $0x50] sm:$0xff]   ;;  %v1222_v25 = vld [vmem:[%s1373_s2 + $0x58] sm:$0xff]   ;;  %s1081_s18 = smov 96   ;;  %vm553_vm8 = vcmask 781824  }
  0x11   :  { %835 = vmatprep.subr.bf16.mxu0 %v1075_v4  ;;  %877 = vmatprep.subr.bf16.mxu1 %v1075_v4  ;;  %v1234_v26 = vld [vmem:[%s1373_s2 + $0x60] sm:$0xff]   ;;  %v1245_v27 = vld [vmem:[%s1373_s2 + $0x68] sm:$0xff]   ;;  %v1254_v28 = vld [vmem:[%s1373_s2 + $0x70] sm:$0xff]   ;;  %s1082_s25 = smov [#allocation2]   ;;  %vm692_vm9 = vcmask 1044224  }
  0x12   :  { %v272_v44 = vld [vmem:[%s1372_s1] sm:$0xf]  ;;  %s700_s26 = sshll.u32 %s1082_s25, 4  ;;  %s701_s26 = int_to_ptr.vmem [resolvable:$true] %s700_s26 }
  0x13   :  { %v273_v45 = vmul.f32 5.656854, %v272_v44  ;;  %v407_v0 = vld [vmem:[%s1372_s1] sm:$0xf]  ;;  %s1049_s27 = scalar_lea.vmem %s701_s26, 64  ;;  %p1054_p1 = scmp.lt.s32.totalorder %s701_s26, %s701_s26 }
  0x14   :  { %836 = vmatpush3.bf16.msra.mxu0 %v1148_v10  ;;  %878 = vmatpush3.bf16.msra.mxu1 %v1148_v10  ;;  %v408_v1 = vmul.f32 5.656854, %v407_v0  ;;  %v685_v6 = vld [vmem:[%s1372_s1] sm:$0xf]  ;;  %p1050_p0 = scmp.ne.s32.totalorder %s701_s26, %s1049_s27  ;;  %p1055_p2 = scmp.lt.s32.totalorder %s1049_s27, %s1049_s27 }
  0x15   :  { %841 = vmatprep.subr.bf16.mxu0 %v1075_v4  ;;  %883 = vmatprep.subr.bf16.mxu1 %v1075_v4 }
  0x16   :  { %p1056_p3 = por %p1055_p2, %p1054_p1 }
  0x18   :  { %p1057_p4 = pnand %p1056_p3, %p1050_p0 }
  0x81   :  { %v53_v13 = vpop.permute.xlu0 %52  ;;  %v418_v29 = vpop.permute.xlu1 %417 }
  0x82   :  { %vm54_vm1 = vcmp.eq.s32.totalorder %v1157_v12, %v53_v13  ;;  %vm419_vm4 = vcmp.eq.s32.totalorder %v1157_v12, %v418_v29 }
  0x83   :  { %v55_v14 = vsel %vm54_vm1, 1.0, %v1075_v4  ;;  %v420_v31 = vsel %vm419_vm4, 1.0, %v1075_v4 }
  0x84   :  { %v56_v16 = vpack.c.bf16 %v55_v14, %v55_v14  ;;  %v421_v32 = vpack.c.bf16 %v420_v31, %v420_v31 }
  0x86   :  { %v279_v17 = vpop.permute.xlu0 %278  ;;  %838 = vmatmul.mubr.msk.bf16.vlgmr.msra.gmra.mrb[0].mxu0 %vm87_vm2, %v56_v16  ;;  %v557_v30 = vpop.permute.xlu1 %556 }
  0x87   :  { %vm280_vm3 = vcmp.eq.s32.totalorder %v1157_v12, %v279_v17  ;;  %842 = vmatpush3.bf16.msra.mxu0 %v1164_v15  ;;  %851 = vmatprep.mubr.msk.bf16.mxu0 %vm1078_vm0, %v1075_v4  ;;  %vm558_vm5 = vcmp.eq.s32.totalorder %v1157_v12, %v557_v30 }
  0x88   :  { %v281_v19 = vsel %vm280_vm3, 1.0, %v1075_v4  ;;  %843 = vmatprep.subr.bf16.mxu0 %v1075_v4  ;;  %v559_v33 = vsel %vm558_vm5, 1.0, %v1075_v4 }
  0x89   :  { %v282_v20 = vpack.c.bf16 %v281_v19, %v281_v19  ;;  %v560_v34 = vpack.c.bf16 %v559_v33, %v559_v33 }
  0x8b   :  { %844 = vmatpush3.bf16.msra.mxu0 %v1172_v18  ;;  %880 = vmatmul.mubr.msk.bf16.vlgmr.msra.gmra.mrb[0].mxu1 %vm87_vm2, %v282_v20 }
  0x8c   :  { %884 = vmatpush3.bf16.msra.mxu1 %v1164_v15  ;;  %845 = vmatprep.subr.bf16.mxu0 %v1075_v4 }
  0x8d   :  { %885 = vmatprep.subr.bf16.mxu1 %v1075_v4  ;;  %893 = vmatprep.mubr.msk.bf16.mxu1 %vm1078_vm0, %v1075_v4 }
  0x8f   :  { %846 = vmatpush3.bf16.msra.mxu0 %v1183_v21 }
  0x90   :  { %886 = vmatpush3.bf16.msra.mxu1 %v1172_v18  ;;  %847 = vmatprep.subr.bf16.mxu0 %v1075_v4 }
  0x91   :  { %887 = vmatprep.subr.bf16.mxu1 %v1075_v4 }
  0x93   :  { %848 = vmatpush3.bf16.msra.mxu0 %v1194_v22 }
  0x94   :  { %888 = vmatpush3.bf16.msra.mxu1 %v1183_v21  ;;  %849 = vmatprep.subr.bf16.mxu0 %v1075_v4 }
  0x95   :  { %889 = vmatprep.subr.bf16.mxu1 %v1075_v4 }
  0x97   :  { %850 = vmatpush3.bf16.msra.mxu0 %v1203_v23 }
  0x98   :  { %890 = vmatpush3.bf16.msra.mxu1 %v1194_v22  ;;  %855 = vmatprep.subr.bf16.mxu0 %v1075_v4 }
  0x99   :  { %891 = vmatprep.subr.bf16.mxu1 %v1075_v4 }
  0x9a   :  { %852 = vmatmul.mubr.msk.bf16.vlgmr.msra.gmra.mrb[4].mxu0 %vm87_vm2, %v56_v16 }
  0x9b   :  { %856 = vmatpush3.bf16.msra.mxu0 %v1212_v24  ;;  %865 = vmatprep.mubr.msk.bf16.mxu0 %vm1078_vm0, %v1075_v4 }
  0x9c   :  { %892 = vmatpush3.bf16.msra.mxu1 %v1203_v23  ;;  %857 = vmatprep.subr.bf16.mxu0 %v1075_v4 }
  0x9d   :  { %897 = vmatprep.subr.bf16.mxu1 %v1075_v4 }
  0x9f   :  { %858 = vmatpush3.bf16.msra.mxu0 %v1222_v25  ;;  %894 = vmatmul.mubr.msk.bf16.vlgmr.msra.gmra.mrb[0].mxu1 %vm87_vm2, %v282_v20 }
  0xa0   :  { %898 = vmatpush3.bf16.msra.mxu1 %v1212_v24  ;;  %859 = vmatprep.subr.bf16.mxu0 %v1075_v4 }
  0xa1   :  { %899 = vmatprep.subr.bf16.mxu1 %v1075_v4  ;;  %907 = vmatprep.mubr.msk.bf16.mxu1 %vm1078_vm0, %v1075_v4 }
  0xa3   :  { %860 = vmatpush3.bf16.msra.mxu0 %v1234_v26 }
  0xa4   :  { %900 = vmatpush3.bf16.msra.mxu1 %v1222_v25  ;;  %861 = vmatprep.subr.bf16.mxu0 %v1075_v4 }
  0xa5   :  { %901 = vmatprep.subr.bf16.mxu1 %v1075_v4 }
  0xa7   :  { %862 = vmatpush3.bf16.msra.mxu0 %v1245_v27 }
  0xa8   :  { %902 = vmatpush3.bf16.msra.mxu1 %v1234_v26  ;;  %863 = vmatprep.subr.bf16.mxu0 %v1075_v4 }
  0xa9   :  { %903 = vmatprep.subr.bf16.mxu1 %v1075_v4 }
  0xab   :  { %864 = vmatpush3.bf16.msra.mxu0 %v1254_v28 }
  0xac   :  { %904 = vmatpush3.bf16.msra.mxu1 %v1245_v27  ;;  %911 = vmatprep.subr.bf16.mxu0 %v1075_v4 }
  0xad   :  { %905 = vmatprep.subr.bf16.mxu1 %v1075_v4 }
  0xae   :  { %866 = vmatmul.mubr.msk.bf16.vlgmr.msra.gmra.mrb[8].mxu0 %vm87_vm2, %v56_v16 }
  0xaf   :  { %912 = vmatpush3.bf16.msra.mxu0 %v1109_v3  ;;  %921 = vmatprep.mubr.msk.bf16.mxu0 %vm1078_vm0, %v1075_v4 }
  0xb0   :  { %906 = vmatpush3.bf16.msra.mxu1 %v1254_v28  ;;  %913 = vmatprep.subr.bf16.mxu0 %v1075_v4 }
  0xb1   :  { %953 = vmatprep.subr.bf16.mxu1 %v1075_v4 }
  0xb3   :  { %908 = vmatmul.mubr.msk.bf16.vlgmr.msra.gmra.mrb[0].mxu1 %vm87_vm2, %v282_v20  ;;  %914 = vmatpush3.bf16.msra.mxu0 %v1117_v5 }
  0xb4   :  { %954 = vmatpush3.bf16.msra.mxu1 %v1109_v3  ;;  %915 = vmatprep.subr.bf16.mxu0 %v1075_v4 }
  0xb5   :  { %955 = vmatprep.subr.bf16.mxu1 %v1075_v4  ;;  %963 = vmatprep.mubr.msk.bf16.mxu1 %vm1078_vm0, %v1075_v4 }
  0xb7   :  { %916 = vmatpush3.bf16.msra.mxu0 %v1125_v8 }
  0xb8   :  { %956 = vmatpush3.bf16.msra.mxu1 %v1117_v5  ;;  %917 = vmatprep.subr.bf16.mxu0 %v1075_v4 }
  0xb9   :  { %957 = vmatprep.subr.bf16.mxu1 %v1075_v4 }
  0xbb   :  { %918 = vmatpush3.bf16.msra.mxu0 %v1139_v9 }
  0xbc   :  { %958 = vmatpush3.bf16.msra.mxu1 %v1125_v8  ;;  %919 = vmatprep.subr.bf16.mxu0 %v1075_v4 }
  0xbd   :  { %959 = vmatprep.subr.bf16.mxu1 %v1075_v4 }
  0xbf   :  { %920 = vmatpush3.bf16.msra.mxu0 %v1148_v10 }
  0xc0   :  { %960 = vmatpush3.bf16.msra.mxu1 %v1139_v9  ;;  %925 = vmatprep.subr.bf16.mxu0 %v1075_v4  ;;  %v686_v9 = vmul.f32 5.656854, %v685_v6 }
  0xc1   :  { %961 = vmatprep.subr.bf16.mxu1 %v1075_v4 }
  0xc2   :  { %922 = vmatmul.mubr.msk.bf16.vlgmr.msra.gmra.mrb[12].mxu0 %vm87_vm2, %v421_v32 }
  0xc3   :  { %926 = vmatpush3.bf16.msra.mxu0 %v1164_v15  ;;  %935 = vmatprep.mubr.msk.bf16.mxu0 %vm1078_vm0, %v1075_v4 }
  0xc4   :  { %962 = vmatpush3.bf16.msra.mxu1 %v1148_v10  ;;  %927 = vmatprep.subr.bf16.mxu0 %v1075_v4 }
  0xc5   :  { %967 = vmatprep.subr.bf16.mxu1 %v1075_v4 }
  0xc7   :  { %928 = vmatpush3.bf16.msra.mxu0 %v1172_v18  ;;  %964 = vmatmul.mubr.msk.bf16.vlgmr.msra.gmra.mrb[4].mxu1 %vm87_vm2, %v560_v34 }
  0xc8   :  { %968 = vmatpush3.bf16.msra.mxu1 %v1164_v15  ;;  %929 = vmatprep.subr.bf16.mxu0 %v1075_v4 }
  0xc9   :  { %969 = vmatprep.subr.bf16.mxu1 %v1075_v4  ;;  %977 = vmatprep.mubr.msk.bf16.mxu1 %vm1078_vm0, %v1075_v4 }
  0xcb   :  { %930 = vmatpush3.bf16.msra.mxu0 %v1183_v21 }
  0xcc   :  { %970 = vmatpush3.bf16.msra.mxu1 %v1172_v18  ;;  %931 = vmatprep.subr.bf16.mxu0 %v1075_v4 }
  0xcd   :  { %971 = vmatprep.subr.bf16.mxu1 %v1075_v4 }
  0xcf   :  { %932 = vmatpush3.bf16.msra.mxu0 %v1194_v22 }
  0xd0   :  { %972 = vmatpush3.bf16.msra.mxu1 %v1183_v21  ;;  %933 = vmatprep.subr.bf16.mxu0 %v1075_v4 }
  0xd1   :  { %973 = vmatprep.subr.bf16.mxu1 %v1075_v4 }
  0xd3   :  { %934 = vmatpush3.bf16.msra.mxu0 %v1203_v23 }
  0xd4   :  { %974 = vmatpush3.bf16.msra.mxu1 %v1194_v22  ;;  %939 = vmatprep.subr.bf16.mxu0 %v1075_v4 }
  0xd5   :  { %975 = vmatprep.subr.bf16.mxu1 %v1075_v4 }
  0xd6   :  { %936 = vmatmul.mubr.msk.bf16.vlgmr.msra.gmra.mrb[12].mxu0 %vm87_vm2, %v421_v32 }
  0xd7   :  { %940 = vmatpush3.bf16.msra.mxu0 %v1212_v24  ;;  %949 = vmatprep.mubr.msk.bf16.mxu0 %vm1078_vm0, %v1075_v4 }
  0xd8   :  { %976 = vmatpush3.bf16.msra.mxu1 %v1203_v23  ;;  %941 = vmatprep.subr.bf16.mxu0 %v1075_v4 }
  0xd9   :  { %981 = vmatprep.subr.bf16.mxu1 %v1075_v4 }
  0xdb   :  { %942 = vmatpush3.bf16.msra.mxu0 %v1222_v25  ;;  %978 = vmatmul.mubr.msk.bf16.vlgmr.msra.gmra.mrb[4].mxu1 %vm87_vm2, %v560_v34 }
  0xdc   :  { %982 = vmatpush3.bf16.msra.mxu1 %v1212_v24  ;;  %943 = vmatprep.subr.bf16.mxu0 %v1075_v4 }
  0xdd   :  { %983 = vmatprep.subr.bf16.mxu1 %v1075_v4  ;;  %991 = vmatprep.mubr.msk.bf16.mxu1 %vm1078_vm0, %v1075_v4 }
  0xdf   :  { %944 = vmatpush3.bf16.msra.mxu0 %v1234_v26 }
  0xe0   :  { %984 = vmatpush3.bf16.msra.mxu1 %v1222_v25  ;;  %945 = vmatprep.subr.bf16.mxu0 %v1075_v4 }
  0xe1   :  { %985 = vmatprep.subr.bf16.mxu1 %v1075_v4 }
  0xe3   :  { %946 = vmatpush3.bf16.msra.mxu0 %v1245_v27 }
  0xe4   :  { %986 = vmatpush3.bf16.msra.mxu1 %v1234_v26  ;;  %947 = vmatprep.subr.bf16.mxu0 %v1075_v4 }
  0xe5   :  { %987 = vmatprep.subr.bf16.mxu1 %v1075_v4 }
  0xe7   :  { %948 = vmatpush3.bf16.msra.mxu0 %v1254_v28 }
  0xe8   :  { %988 = vmatpush3.bf16.msra.mxu1 %v1245_v27 }
  0xe9   :  { %989 = vmatprep.subr.bf16.mxu1 %v1075_v4  ;;  %v546_v4 = vld [vmem:[%s1372_s1] sm:$0xf] }
  0xea   :  { %950 = vmatmul.mubr.msk.bf16.vlgmr.msra.gmra.mrb[12].mxu0 %vm87_vm2, %v421_v32  ;;  %v547_v5 = vmul.f32 5.656854, %v546_v4 }
  0xec   :  { %990 = vmatpush3.bf16.msra.mxu1 %v1254_v28 }
  0xef   :  { %992 = vmatmul.mubr.msk.bf16.vlgmr.msra.gmra.mrb[4].mxu1 %vm87_vm2, %v560_v34 }
 0x159   :  { %v125_v35 = vpop.f32.mrb[0].mxu0 }
 0x15a   :  { %v839_v36 = vpop.f32.mrb[1].mxu0 }
 0x15b   :  { %v128_v37 = vpop.f32.mrb[2].mxu0 }
 0x15c   :  { %v840_v38 = vpop.f32.mrb[3].mxu0 }
 0x16d   :  { %v195_v39 = vpop.f32.mrb[4].mxu0 }
 0x16e   :  { %v196_v40 = vadd.f32 %v195_v39, %v125_v35  ;;  %v853_v41 = vpop.f32.mrb[5].mxu0 }
 0x16f   :  { %v198_v42 = vpop.f32.mrb[6].mxu0 }
 0x170   :  { %v854_v43 = vpop.f32.mrb[7].mxu0 }
 0x181   :  { %v265_v46 = vpop.f32.mrb[8].mxu0 }
 0x182   :  { %v271_v47 = vadd.f32 %v265_v46, %v196_v40  ;;  %v867_v48 = vpop.f32.mrb[9].mxu0 }
 0x183   :  { %v268_v49 = vpop.f32.mrb[10].mxu0 }
 0x184   :  { %v274_v50 = vadd.f32 %v273_v45, %v271_v47  ;;  %v868_v51 = vpop.f32.mrb[11].mxu0 }
 0x186   :  { %276 = vst.msk [vmem:[#allocation2] sm:$0xf] %vm275_vm6, %v274_v50  ;;  %v400_v52 = vpop.f32.mrb[0].mxu1 }
 0x187   :  { %410 = vrot.lane.b32.xlu1 %v400_v52, %s1079_s0  ;;  %v909_v53 = vpop.f32.mrb[1].mxu1 }
 0x188   :  { %v403_v54 = vpop.f32.mrb[2].mxu1 }
 0x189   :  { %v910_v55 = vpop.f32.mrb[3].mxu1 }
 0x1bd   :  { %v539_v56 = vpop.f32.mrb[12].mxu0 }
 0x1be   :  { %549 = vrot.lane.b32.xlu0 %v539_v56, %s1080_s17  ;;  %v951_v57 = vpop.f32.mrb[13].mxu0 }
 0x1bf   :  { %v542_v58 = vpop.f32.mrb[14].mxu0 }
 0x1c0   :  { %v952_v59 = vpop.f32.mrb[15].mxu0 }
 0x1c2   :  { %v678_v60 = vpop.f32.mrb[4].mxu1 }
 0x1c3   :  { %688 = vrot.lane.b32.xlu1 %v678_v60, %s1081_s18  ;;  %v993_v61 = vpop.f32.mrb[5].mxu1 }
 0x1c4   :  { %v681_v62 = vpop.f32.mrb[6].mxu1 }
 0x1c5   :  { %v994_v63 = vpop.f32.mrb[7].mxu1 }
 0x1f9   :  { %v411_v2 = vpop.permute.xlu1 %410 }
 0x1fa   :  { %v413_v3 = vadd.f32 %v411_v2, %v408_v1 }
 0x1fc   :  { %415 = vst.msk [vmem:[#allocation2] sm:$0xf] %vm414_vm7, %v413_v3 }
 0x230   :  { %v550_v7 = vpop.permute.xlu0 %549 }
 0x231   :  { %v552_v8 = vadd.f32 %v550_v7, %v547_v5 }
 0x233   :  { %554 = vst.msk [vmem:[#allocation2] sm:$0xf] %vm553_vm8, %v552_v8 }
 0x235   :  { %v689_v10 = vpop.permute.xlu1 %688 }
 0x236   :  { %v691_v11 = vadd.f32 %v689_v10, %v686_v9 }
 0x238   :  { %693 = vst.msk [vmem:[#allocation2] sm:$0xf] %vm692_vm9, %v691_v11 }
 0x239   :  { %1060 = shalt.err (!%p1057_p4)
}
 0x23a   :  { %s1061_s29 = scalar_lea.hbm %s1374_s3, 64 }
 0x23b   :  { %p1062_p5 = scmp.ne.s32.totalorder %s1374_s3, %s1061_s29  ;;  %p1065_p6 = scmp.lt.u32.totalorder %s1061_s29, %s1374_s3 }
 0x23d   :  { %p1067_p7 = pnand %p1065_p6, %p1062_p5 }
 0x23f   :  { %1070 = shalt.err (!%p1067_p7)
}
 0x240   :  { %703 = dma.vmem_to_hbm [thread:$0]  %s701_s26, 64, %s1374_s3, [#allocation3]  }
 0x241   :  { %1071 = dma.done.wait [#allocation3], 64  }
 0x242   :  { %1072 = vsyncadd [#allocation3], 4294967232 }
 0x243   :  { %707 = vsyncpa [#allocation3], 1 }

</bundles_post_ra>
